<compile_context>
chip_gen: v7x
topology: tpu7x:2x2x1
jax: 0.10.0
libtpu: 0.0.40
codegen_flags: <defaults>
</compile_context>

<pallas_src>
import jax
import jax.numpy as jnp
import numpy as np
from jax.experimental import pallas as pl
from jax.experimental.pallas import tpu as pltpu

LANE = 128
NEG_INF_BIAS = -1e9                        # finite sentinel (avoid -inf - -inf NaN)
VMEM_WS_BUDGET = 28 * 1024 * 1024          # double-buffered working-set cap (v7x-safe)
RHS_RESIDENT_BYTES = 8 * 1024 * 1024       # keep the whole RHS VMEM-resident below this


def _round_up(x, m):
    return (x + m - 1) // m * m


def _rhs_is_resident(n_pad, width_pad):
    return n_pad * width_pad * 2 <= RHS_RESIDENT_BYTES


def _working_set_bytes(t, n_pad, width_pad):
    s_tiles = 2 * t * t * 2                        # double-buffered bf16 S tiles
    if _rhs_is_resident(n_pad, width_pad):
        rhs = n_pad * width_pad * 2                # whole bf16 RHS, fetched once
    else:
        rhs = 2 * t * width_pad * 2                # double-buffered bf16 RHS row-blocks
    out = 2 * t * width_pad * 4                    # double-buffered output blocks (f32 worst case)
    acc = t * width_pad * 4                        # f32 accumulator scratch
    bias = 2 * width_pad * 4
    return s_tiles + rhs + out + acc + bias


def _choose_tiles(num_nodes, width_pad):
    """Pick (n_pad, tile): biggest tile whose working set fits the v7x-safe
    budget, keeps >=2 row blocks (megacore) when possible, and does not
    over-pad the N^2 S stream by more than ~12.5%."""
    n_pad = _round_up(num_nodes, LANE)
    for t in (1024, 512, 256, 128):
        cand_pad = _round_up(n_pad, t)
        if t != LANE:
            if (cand_pad - n_pad) * 8 > n_pad:                 # over-padding guard
                continue
            if cand_pad >= 2 * LANE and cand_pad // t < 2:     # v7x: 2 TCs need >=2 row blocks
                continue
            if _working_set_bytes(t, cand_pad, width_pad) > VMEM_WS_BUDGET:
                continue
        return cand_pad, t
    return n_pad, LANE


def sgc_tiling(num_nodes, num_classes):
    """Public helper: (n_pad, tile) so callers can build S pre-padded."""
    c_pad = _round_up(num_classes, LANE)
    return _choose_tiles(num_nodes, c_pad)


def _choose_xw_row_tile(t, f_pad, c_pad):
    for tz in (1024, 512, 256, 128):
        if tz > t:
            continue
        ws = 2 * tz * f_pad * 2 + f_pad * c_pad * 2 + 2 * tz * c_pad * 2
        if ws <= 16 * 1024 * 1024:
            return tz
    return LANE


def _compiler_params_prop(ws_bytes):
    vmem_limit = min(max(32 << 20, ws_bytes + (8 << 20)), 48 << 20)
    return pltpu.CompilerParams(
        dimension_semantics=("parallel", "arbitrary"),
        vmem_limit_bytes=vmem_limit,
    )


# ---------------------------------------------------------------------------
# Kernels
# ---------------------------------------------------------------------------

def _xw_kernel(x_ref, w_ref, z_ref):
    """Z = X @ W (tiny matmul done before propagation; bf16 in, f32 acc, bf16 out)."""
    z_ref[...] = jnp.dot(
        x_ref[...], w_ref[...], preferred_element_type=jnp.float32
    ).astype(z_ref.dtype)


def _make_propagate_kernel(rhs_resident, tk):
    """One row-block of S @ H, accumulated over k tiles in f32 VMEM scratch."""

    def kernel(s_ref, h_ref, o_ref, acc_ref):
        k = pl.program_id(1)

        @pl.when(k == 0)
        def _():
            acc_ref[...] = jnp.zeros_like(acc_ref)

        if rhs_resident:
            start = pl.multiple_of(k * tk, tk)
            rhs = h_ref[pl.ds(start, tk), :]       # VMEM-resident RHS, slice in place
        else:
            rhs = h_ref[...]                       # streamed (tk, C) row-block

        acc_ref[...] += jnp.dot(s_ref[...], rhs, preferred_element_type=jnp.float32)

        @pl.when(k == pl.num_programs(1) - 1)
        def _():
            o_ref[...] = acc_ref[...].astype(o_ref.dtype)

    return kernel


def _make_propagate_logsoftmax_kernel(rhs_resident, tk):
    """Second propagation round fused with bias add and log_softmax."""

    def kernel(s_ref, h_ref, b_ref, o_ref, acc_ref):
        k = pl.program_id(1)

        @pl.when(k == 0)
        def _():
            acc_ref[...] = jnp.zeros_like(acc_ref)

        if rhs_resident:
            start = pl.multiple_of(k * tk, tk)
            rhs = h_ref[pl.ds(start, tk), :]
        else:
            rhs = h_ref[...]

        acc_ref[...] += jnp.dot(s_ref[...], rhs, preferred_element_type=jnp.float32)

        @pl.when(k == pl.num_programs(1) - 1)
        def _():
            # bias: padded class columns carry -1e9 -> ignored by log_softmax
            logits = acc_ref[...] + b_ref[...]
            m = jnp.max(logits, axis=1, keepdims=True)
            sh = logits - m
            lse = jnp.log(jnp.sum(jnp.exp(sh), axis=1, keepdims=True))
            o_ref[...] = sh - lse

    return kernel


# ---------------------------------------------------------------------------
# Forward wrapper
# ---------------------------------------------------------------------------

@jax.jit
def sgc_forward(x, s_pad, w, b):
    """SGC forward: log_softmax(S @ (S @ (x @ W)) + b).

    `s_pad` is the pre-padded bf16 propagation matrix from
    build_sgc_propagation_matrix (padded rows/cols are all-zero).
    """
    n, f = x.shape
    c = w.shape[1]

    f_pad = _round_up(f, LANE)
    c_pad = _round_up(c, LANE)
    n_pad, t = _choose_tiles(n, c_pad)

    assert s_pad.shape == (n_pad, n_pad), (s_pad.shape, n_pad)
    assert s_pad.dtype == jnp.bfloat16

    rhs_resident = _rhs_is_resident(n_pad, c_pad)
    ws = _working_set_bytes(t, n_pad, c_pad)
    cparams = _compiler_params_prop(ws)

    # Pad the small operands (O(N*F), negligible vs the N^2 S stream).
    x_pad = jnp.zeros((n_pad, f_pad), jnp.bfloat16).at[:n, :f].set(x.astype(jnp.bfloat16))
    w_pad = jnp.zeros((f_pad, c_pad), jnp.bfloat16).at[:f, :c].set(w.astype(jnp.bfloat16))
    b_pad = jnp.full((1, c_pad), NEG_INF_BIAS, jnp.float32).at[:, :c].set(b.astype(jnp.float32))

    # --- Stage 0: Z = X @ W (tiny, row-tiled) ------------------------------
    tz = _choose_xw_row_tile(t, f_pad, c_pad)
    z = pl.pallas_call(
        _xw_kernel,
        out_shape=jax.ShapeDtypeStruct((n_pad, c_pad), jnp.bfloat16),
        grid_spec=pltpu.PrefetchScalarGridSpec(
            num_scalar_prefetch=0,
            grid=(n_pad // tz,),
            in_specs=[
                pl.BlockSpec((tz, f_pad), lambda i: (i, 0)),      # X row-block
                pl.BlockSpec((f_pad, c_pad), lambda i: (0, 0)),   # W (resident)
            ],
            out_specs=pl.BlockSpec((tz, c_pad), lambda i: (i, 0)),
        ),
        compiler_params=pltpu.CompilerParams(dimension_semantics=("parallel",)),
        cost_estimate=pl.CostEstimate(
            flops=2 * n_pad * f_pad * c_pad,
            transcendentals=0,
            bytes_accessed=n_pad * f_pad * 2 + f_pad * c_pad * 2 + n_pad * c_pad * 2,
        ),
    )(x_pad, w_pad)

    # --- Shared propagation tiling ------------------------------------------
    grid = (n_pad // t, n_pad // t)
    s_spec = pl.BlockSpec((t, t), lambda i, k: (i, k))            # bf16 S tile
    if rhs_resident:
        # whole RHS resident in VMEM: fetched once, sliced with pl.ds in-kernel
        rhs_spec = pl.BlockSpec((n_pad, c_pad), lambda i, k: (0, 0))
    else:
        rhs_spec = pl.BlockSpec((t, c_pad), lambda i, k: (k, 0))  # streamed row-block
    out_spec = pl.BlockSpec((t, c_pad), lambda i, k: (i, 0))
    bytes_s = n_pad * n_pad * 2
    flops_prop = 2 * n_pad * n_pad * c_pad

    # --- Stage 1: H1 = S @ Z (bf16 out) -------------------------------------
    h1 = pl.pallas_call(
        _make_propagate_kernel(rhs_resident, t),
        out_shape=jax.ShapeDtypeStruct((n_pad, c_pad), jnp.bfloat16),
        grid_spec=pltpu.PrefetchScalarGridSpec(
            num_scalar_prefetch=0,
            grid=grid,
            in_specs=[s_spec, rhs_spec],
            out_specs=out_spec,
            scratch_shapes=[pltpu.VMEM((t, c_pad), jnp.float32)],
        ),
        compiler_params=cparams,
        cost_estimate=pl.CostEstimate(
            flops=flops_prop,
            transcendentals=0,
            bytes_accessed=bytes_s + 2 * n_pad * c_pad * 2,
        ),
    )(s_pad, z)

    # --- Stage 2: out = log_softmax(S @ H1 + b) ------------------------------
    out = pl.pallas_call(
        _make_propagate_logsoftmax_kernel(rhs_resident, t),
        out_shape=jax.ShapeDtypeStruct((n_pad, c_pad), jnp.float32),
        grid_spec=pltpu.PrefetchScalarGridSpec(
            num_scalar_prefetch=0,
            grid=grid,
            in_specs=[
                s_spec,
                rhs_spec,
                pl.BlockSpec((1, c_pad), lambda i, k: (0, 0)),    # bias (resident)
            ],
            out_specs=out_spec,
            scratch_shapes=[pltpu.VMEM((t, c_pad), jnp.float32)],
        ),
        compiler_params=cparams,
        cost_estimate=pl.CostEstimate(
            flops=flops_prop,
            transcendentals=n_pad * c_pad,
            bytes_accessed=bytes_s + n_pad * c_pad * (2 + 4),
        ),
    )(s_pad, h1, b_pad)

    return out[:n, :c]


def build_sgc_propagation_matrix(edge_index, num_nodes, num_nodes_padded):
    """gcn_norm: S = D^-1/2 (A + I) D^-1/2, built directly at padded size in bf16.

    Padded rows/cols have zero degree -> zero rows/cols (contribute nothing).
    Building S pre-padded in bf16 removes the per-forward O(N^2) pad+cast pass.
    Dense O(N^2) construction is demo-scale glue only.
    """
    row, col = edge_index
    adj = jnp.zeros((num_nodes_padded, num_nodes_padded), jnp.float32)
    adj = adj.at[row, col].set(1.0)
    idx = jnp.arange(num_nodes)
    adj = adj.at[idx, idx].set(1.0)                    # self-loops on real nodes
    deg = jnp.sum(adj, axis=1)
    d_inv_sqrt = jnp.where(deg > 0, deg ** -0.5, 0.0)
    s = d_inv_sqrt[:, None] * adj * d_inv_sqrt[None, :]
    return s.astype(jnp.bfloat16)


if __name__ == "__main__":
    # Small deterministic problem: 32 nodes, 16 input features, 8 classes.
    num_nodes = 32
    num_node_features = 16
    num_classes = 8

    key = jax.random.PRNGKey(0)
    kx, kw, kb = jax.random.split(key, 3)

    x = jax.random.normal(kx, (num_nodes, num_node_features), jnp.float32)
    # Stand-in for torch Linear init (weight transposed to [F_in, C]).
    w = jax.random.normal(kw, (num_node_features, num_classes), jnp.float32) * 0.1
    b = jax.random.normal(kb, (1, num_classes), jnp.float32) * 0.1

    # Deterministic undirected edge_index: ring + chords.
    src = np.arange(num_nodes)
    ring_dst = (src + 1) % num_nodes
    chord_dst = (src + 5) % num_nodes
    rows = np.concatenate([src, ring_dst, src, chord_dst])
    cols = np.concatenate([ring_dst, src, chord_dst, src])
    edge_index = jnp.asarray(np.stack([rows, cols]), jnp.int32)

    n_pad, _ = sgc_tiling(num_nodes, num_classes)
    s_pad = build_sgc_propagation_matrix(edge_index, num_nodes, n_pad)

    out = sgc_forward(x, s_pad, w, b)
    out = jax.block_until_ready(out)

    assert out.shape == (num_nodes, num_classes)

    # Pure-JAX f32 reference: SGConv(K=2) then log_softmax (same S the kernel consumes).
    s_f32 = s_pad[:num_nodes, :num_nodes].astype(jnp.float32)
    ref = jax.nn.log_softmax(s_f32 @ (s_f32 @ x) @ w + b, axis=1)
    max_err = float(np.max(np.abs(np.asarray(out) - np.asarray(ref))))
    assert np.allclose(np.asarray(out), np.asarray(ref), atol=5e-2), max_err
    # log_softmax rows should sum to ~1 in probability space.
    assert np.allclose(np.exp(np.asarray(out)).sum(axis=1), 1.0, atol=1e-4)
    print("KERNEL_OK")
</pallas_src>

<mosaic_0001>
module attributes {stable_mosaic.version = 11 : i64} {
  func.func @_xw_kernel(%arg0: i32, %arg1: memref<128x128xbf16, #tpu.memory_space<vmem>>, %arg2: memref<128x128xbf16, #tpu.memory_space<vmem>>, %arg3: memref<128x128xbf16, #tpu.memory_space<vmem>>) attributes {dimension_semantics = [#tpu.dimension_semantics<parallel>], iteration_bounds = array<i64: 1>, scalar_prefetch = 0 : i64, scratch_operands = 0 : i64, tpu.core_type = #tpu.core_type<tc>, window_params = [{transform_indices = @transform_0, window_bounds = array<i64: 128, 128>}, {pipeline_mode = #tpu.pipeline_mode<synchronous>, transform_indices = @transform_1, window_bounds = array<i64: 128, 128>}, {transform_indices = @transform_2, window_bounds = array<i64: 128, 128>}]} {
    %c0 = arith.constant 0 : index
    %c0_0 = arith.constant 0 : index
    %0 = vector.load %arg1[%c0, %c0_0] : memref<128x128xbf16, #tpu.memory_space<vmem>>, vector<128x128xbf16>
    %c0_1 = arith.constant 0 : index
    %c0_2 = arith.constant 0 : index
    %1 = vector.load %arg2[%c0_1, %c0_2] : memref<128x128xbf16, #tpu.memory_space<vmem>>, vector<128x128xbf16>
    %cst = arith.constant dense<0.000000e+00> : vector<128x128xf32>
    %2 = tpu.matmul %0, %1, %cst {dimension_numbers = #tpu.dot_dimension_numbers<[1], [0], [0], [1], [0, 0, 1, 1], [], []>} : vector<128x128xbf16>, vector<128x128xbf16>, vector<128x128xf32> -> vector<128x128xf32>
    %3 = arith.truncf %2 : vector<128x128xf32> to vector<128x128xbf16>
    %c0_3 = arith.constant 0 : index
    %c0_4 = arith.constant 0 : index
    %4 = vector.load %arg3[%c0_3, %c0_4] : memref<128x128xbf16, #tpu.memory_space<vmem>>, vector<128x128xbf16>
    tpu.vector_store %arg3[%c0_3, %c0_4], %3 {strides = array<i32>} : memref<128x128xbf16, #tpu.memory_space<vmem>>, vector<128x128xbf16>,
    return
  }
  func.func @transform_0(%arg0: i32) -> (i32, i32) {
    %c0_i32 = arith.constant 0 : i32
    %c0_i32_0 = arith.constant 0 : i32
    return %arg0, %c0_i32 : i32, i32
  }
  func.func @transform_1(%arg0: i32) -> (i32, i32) {
    %c0_i32 = arith.constant 0 : i32
    %c0_i32_0 = arith.constant 0 : i32
    %c0_i32_1 = arith.constant 0 : i32
    return %c0_i32, %c0_i32_0 : i32, i32
  }
  func.func @transform_2(%arg0: i32) -> (i32, i32) {
    %c0_i32 = arith.constant 0 : i32
    %c0_i32_0 = arith.constant 0 : i32
    return %arg0, %c0_i32 : i32, i32
  }
}

module attributes {stable_mosaic.version = 11 : i64} {
  func.func @kernel(%arg0: i32, %arg1: i32, %arg2: memref<128x128xbf16, #tpu.memory_space<vmem>>, %arg3: memref<128x128xbf16, #tpu.memory_space<vmem>>, %arg4: memref<128x128xbf16, #tpu.memory_space<vmem>>, %arg5: memref<128x128xf32, #tpu.memory_space<vmem>>) attributes {dimension_semantics = [#tpu.dimension_semantics<parallel>, #tpu.dimension_semantics<arbitrary>], iteration_bounds = array<i64: 1, 1>, scalar_prefetch = 0 : i64, scratch_operands = 1 : i64, tpu.core_type = #tpu.core_type<tc>, window_params = [{transform_indices = @transform_0, window_bounds = array<i64: 128, 128>}, {pipeline_mode = #tpu.pipeline_mode<synchronous>, transform_indices = @transform_1, window_bounds = array<i64: 128, 128>}, {transform_indices = @transform_2, window_bounds = array<i64: 128, 128>}]} {
    %c0_i32 = arith.constant 0 : i32
    %0 = arith.cmpi eq, %arg1, %c0_i32 : i32
    %1 = arith.extui %0 : i1 to i32
    %c0_i32_0 = arith.constant 0 : i32
    %2 = arith.cmpi ne, %1, %c0_i32_0 : i32
    scf.if %2 {
      %cst_9 = arith.constant 0.000000e+00 : f32
      %15 = vector.broadcast %cst_9 : f32 to vector<128x128xf32>
      %c0_10 = arith.constant 0 : index
      %c0_11 = arith.constant 0 : index
      %16 = vector.load %arg5[%c0_10, %c0_11] : memref<128x128xf32, #tpu.memory_space<vmem>>, vector<128x128xf32>
      tpu.vector_store %arg5[%c0_10, %c0_11], %15 {strides = array<i32>} : memref<128x128xf32, #tpu.memory_space<vmem>>, vector<128x128xf32>,
    } else {
    }
    %c128_i32 = arith.constant 128 : i32
    %3 = arith.muli %arg1, %c128_i32 : i32
    %4 = tpu.assume_multiple %3, 128 : i32
    %5 = arith.index_cast %4 : i32 to index
    %c0 = arith.constant 0 : index
    %6 = vector.load %arg3[%5, %c0] : memref<128x128xbf16, #tpu.memory_space<vmem>>, vector<128x128xbf16>
    %c0_1 = arith.constant 0 : index
    %c0_2 = arith.constant 0 : index
    %7 = vector.load %arg5[%c0_1, %c0_2] : memref<128x128xf32, #tpu.memory_space<vmem>>, vector<128x128xf32>
    %c0_3 = arith.constant 0 : index
    %c0_4 = arith.constant 0 : index
    %8 = vector.load %arg2[%c0_3, %c0_4] : memref<128x128xbf16, #tpu.memory_space<vmem>>, vector<128x128xbf16>
    %cst = arith.constant dense<0.000000e+00> : vector<128x128xf32>
    %9 = tpu.matmul %8, %6, %cst {dimension_numbers = #tpu.dot_dimension_numbers<[1], [0], [0], [1], [0, 0, 1, 1], [], []>} : vector<128x128xbf16>, vector<128x128xbf16>, vector<128x128xf32> -> vector<128x128xf32>
    %10 = arith.addf %7, %9 : vector<128x128xf32>
    %c0_5 = arith.constant 0 : index
    %c0_6 = arith.constant 0 : index
    %11 = vector.load %arg5[%c0_5, %c0_6] : memref<128x128xf32, #tpu.memory_space<vmem>>, vector<128x128xf32>
    tpu.vector_store %arg5[%c0_5, %c0_6], %10 {strides = array<i32>} : memref<128x128xf32, #tpu.memory_space<vmem>>, vector<128x128xf32>,
    %c0_i32_7 = arith.constant 0 : i32
    %12 = arith.cmpi eq, %arg1, %c0_i32_7 : i32
    %13 = arith.extui %12 : i1 to i32
    %c0_i32_8 = arith.constant 0 : i32
    %14 = arith.cmpi ne, %13, %c0_i32_8 : i32
    scf.if %14 {
      %c0_9 = arith.constant 0 : index
      %c0_10 = arith.constant 0 : index
      %15 = vector.load %arg5[%c0_9, %c0_10] : memref<128x128xf32, #tpu.memory_space<vmem>>, vector<128x128xf32>
      %16 = arith.truncf %15 : vector<128x128xf32> to vector<128x128xbf16>
      %c0_11 = arith.constant 0 : index
      %c0_12 = arith.constant 0 : index
      %17 = vector.load %arg4[%c0_11, %c0_12] : memref<128x128xbf16, #tpu.memory_space<vmem>>, vector<128x128xbf16>
      tpu.vector_store %arg4[%c0_11, %c0_12], %16 {strides = array<i32>} : memref<128x128xbf16, #tpu.memory_space<vmem>>, vector<128x128xbf16>,
    } else {
    }
    return
  }
  func.func @transform_0(%arg0: i32, %arg1: i32) -> (i32, i32) {
    %c0_i32 = arith.constant 0 : i32
    return %arg0, %arg1 : i32, i32
  }
  func.func @transform_1(%arg0: i32, %arg1: i32) -> (i32, i32) {
    %c0_i32 = arith.constant 0 : i32
    %c0_i32_0 = arith.constant 0 : i32
    %c0_i32_1 = arith.constant 0 : i32
    return %c0_i32, %c0_i32_0 : i32, i32
  }
  func.func @transform_2(%arg0: i32, %arg1: i32) -> (i32, i32) {
    %c0_i32 = arith.constant 0 : i32
    %c0_i32_0 = arith.constant 0 : i32
    return %arg0, %c0_i32 : i32, i32
  }
}

module attributes {stable_mosaic.version = 11 : i64} {
  func.func @kernel(%arg0: i32, %arg1: i32, %arg2: memref<128x128xbf16, #tpu.memory_space<vmem>>, %arg3: memref<128x128xbf16, #tpu.memory_space<vmem>>, %arg4: memref<1x128xf32, #tpu.memory_space<vmem>>, %arg5: memref<128x128xf32, #tpu.memory_space<vmem>>, %arg6: memref<128x128xf32, #tpu.memory_space<vmem>>) attributes {dimension_semantics = [#tpu.dimension_semantics<parallel>, #tpu.dimension_semantics<arbitrary>], iteration_bounds = array<i64: 1, 1>, scalar_prefetch = 0 : i64, scratch_operands = 1 : i64, tpu.core_type = #tpu.core_type<tc>, window_params = [{transform_indices = @transform_0, window_bounds = array<i64: 128, 128>}, {pipeline_mode = #tpu.pipeline_mode<synchronous>, transform_indices = @transform_1, window_bounds = array<i64: 128, 128>}, {pipeline_mode = #tpu.pipeline_mode<synchronous>, transform_indices = @transform_2, window_bounds = array<i64: 1, 128>}, {transform_indices = @transform_3, window_bounds = array<i64: 128, 128>}]} {
    %c0_i32 = arith.constant 0 : i32
    %0 = arith.cmpi eq, %arg1, %c0_i32 : i32
    %1 = arith.extui %0 : i1 to i32
    %c0_i32_0 = arith.constant 0 : i32
    %2 = arith.cmpi ne, %1, %c0_i32_0 : i32
    scf.if %2 {
      %cst_9 = arith.constant 0.000000e+00 : f32
      %15 = vector.broadcast %cst_9 : f32 to vector<128x128xf32>
      %c0_10 = arith.constant 0 : index
      %c0_11 = arith.constant 0 : index
      %16 = vector.load %arg6[%c0_10, %c0_11] : memref<128x128xf32, #tpu.memory_space<vmem>>, vector<128x128xf32>
      tpu.vector_store %arg6[%c0_10, %c0_11], %15 {strides = array<i32>} : memref<128x128xf32, #tpu.memory_space<vmem>>, vector<128x128xf32>,
    } else {
    }
    %c128_i32 = arith.constant 128 : i32
    %3 = arith.muli %arg1, %c128_i32 : i32
    %4 = tpu.assume_multiple %3, 128 : i32
    %5 = arith.index_cast %4 : i32 to index
    %c0 = arith.constant 0 : index
    %6 = vector.load %arg3[%5, %c0] : memref<128x128xbf16, #tpu.memory_space<vmem>>, vector<128x128xbf16>
    %c0_1 = arith.constant 0 : index
    %c0_2 = arith.constant 0 : index
    %7 = vector.load %arg6[%c0_1, %c0_2] : memref<128x128xf32, #tpu.memory_space<vmem>>, vector<128x128xf32>
    %c0_3 = arith.constant 0 : index
    %c0_4 = arith.constant 0 : index
    %8 = vector.load %arg2[%c0_3, %c0_4] : memref<128x128xbf16, #tpu.memory_space<vmem>>, vector<128x128xbf16>
    %cst = arith.constant dense<0.000000e+00> : vector<128x128xf32>
    %9 = tpu.matmul %8, %6, %cst {dimension_numbers = #tpu.dot_dimension_numbers<[1], [0], [0], [1], [0, 0, 1, 1], [], []>} : vector<128x128xbf16>, vector<128x128xbf16>, vector<128x128xf32> -> vector<128x128xf32>
    %10 = arith.addf %7, %9 : vector<128x128xf32>
    %c0_5 = arith.constant 0 : index
    %c0_6 = arith.constant 0 : index
    %11 = vector.load %arg6[%c0_5, %c0_6] : memref<128x128xf32, #tpu.memory_space<vmem>>, vector<128x128xf32>
    tpu.vector_store %arg6[%c0_5, %c0_6], %10 {strides = array<i32>} : memref<128x128xf32, #tpu.memory_space<vmem>>, vector<128x128xf32>,
    %c0_i32_7 = arith.constant 0 : i32
    %12 = arith.cmpi eq, %arg1, %c0_i32_7 : i32
    %13 = arith.extui %12 : i1 to i32
    %c0_i32_8 = arith.constant 0 : i32
    %14 = arith.cmpi ne, %13, %c0_i32_8 : i32
    scf.if %14 {
      %c0_9 = arith.constant 0 : index
      %c0_10 = arith.constant 0 : index
      %15 = vector.load %arg6[%c0_9, %c0_10] : memref<128x128xf32, #tpu.memory_space<vmem>>, vector<128x128xf32>
      %c0_11 = arith.constant 0 : index
      %c0_12 = arith.constant 0 : index
      %16 = vector.load %arg4[%c0_11, %c0_12] : memref<1x128xf32, #tpu.memory_space<vmem>>, vector<1x128xf32>
      %17 = vector.broadcast %16 : vector<1x128xf32> to vector<128x128xf32>
      %18 = arith.addf %15, %17 : vector<128x128xf32>
      %cst_13 = arith.constant dense<0xFF800000> : vector<128xf32>
      %19 = vector.multi_reduction <maximumf>, %18, %cst_13 [1] : vector<128x128xf32> to vector<128xf32>
      %20 = vector.shape_cast %19 : vector<128xf32> to vector<128x1xf32>
      %21 = vector.broadcast %20 : vector<128x1xf32> to vector<128x128xf32>
      %22 = arith.subf %18, %21 : vector<128x128xf32>
      %23 = math.exp %22 : vector<128x128xf32>
      %cst_14 = arith.constant dense<0.000000e+00> : vector<128xf32>
      %24 = vector.multi_reduction <add>, %23, %cst_14 [1] : vector<128x128xf32> to vector<128xf32>
      %25 = vector.shape_cast %24 : vector<128xf32> to vector<128x1xf32>
      %26 = math.log %25 : vector<128x1xf32>
      %27 = vector.broadcast %26 : vector<128x1xf32> to vector<128x128xf32>
      %28 = arith.subf %22, %27 : vector<128x128xf32>
      %c0_15 = arith.constant 0 : index
      %c0_16 = arith.constant 0 : index
      %29 = vector.load %arg5[%c0_15, %c0_16] : memref<128x128xf32, #tpu.memory_space<vmem>>, vector<128x128xf32>
      tpu.vector_store %arg5[%c0_15, %c0_16], %28 {strides = array<i32>} : memref<128x128xf32, #tpu.memory_space<vmem>>, vector<128x128xf32>,
    } else {
    }
    return
  }
  func.func @transform_0(%arg0: i32, %arg1: i32) -> (i32, i32) {
    %c0_i32 = arith.constant 0 : i32
    return %arg0, %arg1 : i32, i32
  }
  func.func @transform_1(%arg0: i32, %arg1: i32) -> (i32, i32) {
    %c0_i32 = arith.constant 0 : i32
    %c0_i32_0 = arith.constant 0 : i32
    %c0_i32_1 = arith.constant 0 : i32
    return %c0_i32, %c0_i32_0 : i32, i32
  }
  func.func @transform_2(%arg0: i32, %arg1: i32) -> (i32, i32) {
    %c0_i32 = arith.constant 0 : i32
    %c0_i32_0 = arith.constant 0 : i32
    %c0_i32_1 = arith.constant 0 : i32
    return %c0_i32, %c0_i32_0 : i32, i32
  }
  func.func @transform_3(%arg0: i32, %arg1: i32) -> (i32, i32) {
    %c0_i32 = arith.constant 0 : i32
    %c0_i32_0 = arith.constant 0 : i32
    return %arg0, %c0_i32 : i32, i32
  }
}

</mosaic_0001>

<bundles_post_ra>
// kernel: sgc_forward.4
= control target key start
LH: loop header
LB: loop body
LE: loop exit
PB: predicated region body
PF: predicated region fallthrough
CT: control target
= control target key end

     0   :  { %s677_s1 = inlined_call_operand.vmem [shape: bf16[128,128], index: 1, kind: input, shape index: {}]   ;;  %s678_s0 = inlined_call_operand.vmem [shape: bf16[128,128], index: 0, kind: input, shape index: {}]   ;;  %s679_s2 = inlined_call_operand.vmem [shape: bf16[128,128], index: 2, kind: output, shape index: {}]  }
   0x1   :  { %v574_v0 = vld [vmem:[%s677_s1] sm:$0xff]   ;;  %v575_v1 = vld [vmem:[%s677_s1 + $0x8] sm:$0xff]   ;;  %v576_v2 = vld [vmem:[%s677_s1 + $0x10] sm:$0xff]  }
   0x2   :  { %526 = vmatprep.subr.bf16.mxu0 %v574_v0  ;;  %558 = vmatprep.subr.bf16.mxu1 %v574_v0  ;;  %v577_v3 = vld [vmem:[%s677_s1 + $0x18] sm:$0xff]   ;;  %v582_v4 = vld [vmem:[%s678_s0] sm:$0xff]   ;;  %v579_v7 = vld [vmem:[%s677_s1 + $0x28] sm:$0xff]  }
   0x3   :  { %527 = vmatpush3.bf16.msra.mxu0 %v574_v0  ;;  %566 = vmatpush3.bf16.msra.mxu1 %v574_v0  ;;  %v583_v5 = vld [vmem:[%s678_s0 + $0x20] sm:$0xff]   ;;  %v580_v8 = vld [vmem:[%s677_s1 + $0x30] sm:$0xff]   ;;  %v581_v9 = vld [vmem:[%s677_s1 + $0x38] sm:$0xff]  }
   0x4   :  { %528 = vmatprep.subr.bf16.mxu0 %v575_v1  ;;  %559 = vmatprep.subr.bf16.mxu1 %v575_v1  ;;  %v578_v6 = vld [vmem:[%s677_s1 + $0x20] sm:$0xff]   ;;  %v584_v10 = vld [vmem:[%s678_s0 + $0x8] sm:$0xff]   ;;  %v586_v12 = vld [vmem:[%s678_s0 + $0x10] sm:$0xff]  }
   0x5   :  { %542 = vmatprep.mubr.bf16.mxu0 %v582_v4  ;;  %550 = vmatprep.mubr.bf16.mxu1 %v583_v5  ;;  %v585_v11 = vld [vmem:[%s678_s0 + $0x28] sm:$0xff]   ;;  %v587_v13 = vld [vmem:[%s678_s0 + $0x30] sm:$0xff]   ;;  %v588_v14 = vld [vmem:[%s678_s0 + $0x18] sm:$0xff]  }
   0x6   :  { %v589_v15 = vld [vmem:[%s678_s0 + $0x38] sm:$0xff]  }
   0x7   :  { %529 = vmatpush3.bf16.msra.mxu0 %v575_v1  ;;  %567 = vmatpush3.bf16.msra.mxu1 %v575_v1 }
   0x8   :  { %530 = vmatprep.subr.bf16.mxu0 %v576_v2  ;;  %560 = vmatprep.subr.bf16.mxu1 %v576_v2 }
   0xb   :  { %531 = vmatpush3.bf16.msra.mxu0 %v576_v2  ;;  %568 = vmatpush3.bf16.msra.mxu1 %v576_v2 }
   0xc   :  { %532 = vmatprep.subr.bf16.mxu0 %v577_v3  ;;  %561 = vmatprep.subr.bf16.mxu1 %v577_v3 }
   0xf   :  { %533 = vmatpush3.bf16.msra.mxu0 %v577_v3  ;;  %569 = vmatpush3.bf16.msra.mxu1 %v577_v3 }
  0x10   :  { %534 = vmatprep.subr.bf16.mxu0 %v578_v6  ;;  %562 = vmatprep.subr.bf16.mxu1 %v578_v6 }
  0x13   :  { %535 = vmatpush3.bf16.msra.mxu0 %v578_v6  ;;  %570 = vmatpush3.bf16.msra.mxu1 %v578_v6 }
  0x14   :  { %536 = vmatprep.subr.bf16.mxu0 %v579_v7  ;;  %563 = vmatprep.subr.bf16.mxu1 %v579_v7 }
  0x17   :  { %537 = vmatpush3.bf16.msra.mxu0 %v579_v7  ;;  %571 = vmatpush3.bf16.msra.mxu1 %v579_v7 }
  0x18   :  { %538 = vmatprep.subr.bf16.mxu0 %v580_v8  ;;  %564 = vmatprep.subr.bf16.mxu1 %v580_v8 }
  0x1b   :  { %539 = vmatpush3.bf16.msra.mxu0 %v580_v8  ;;  %572 = vmatpush3.bf16.msra.mxu1 %v580_v8 }
  0x1c   :  { %540 = vmatprep.subr.bf16.mxu0 %v581_v9  ;;  %565 = vmatprep.subr.bf16.mxu1 %v581_v9 }
  0x1f   :  { %541 = vmatpush3.bf16.msra.mxu0 %v581_v9  ;;  %573 = vmatpush3.bf16.msra.mxu1 %v581_v9 }
  0x22   :  { %543 = vmatmul.mubr.bf16.vlgmr.msra.gmra.mrb[0].mxu0 %v584_v10  ;;  %551 = vmatmul.mubr.bf16.vlgmr.msra.gmra.mrb[0].mxu1 %v585_v11 }
  0x23   :  { %546 = vmatprep.mubr.bf16.mxu0 %v586_v12  ;;  %554 = vmatprep.mubr.bf16.mxu1 %v587_v13 }
  0x2a   :  { %547 = vmatmul.mubr.bf16.gmra.mrb[4].mxu0 %v588_v14  ;;  %555 = vmatmul.mubr.bf16.gmra.mrb[4].mxu1 %v589_v15 }
  0xf5   :  { %v544_v16 = vpop.f32.mrb[0].mxu0  ;;  %v552_v17 = vpop.f32.mrb[0].mxu1 }
  0xf6   :  { %v215_v18 = vpop.f32.mrb[1].mxu0  ;;  %v247_v19 = vpop.f32.mrb[1].mxu1 }
  0xf7   :  { %v545_v20 = vpop.f32.mrb[2].mxu0  ;;  %v553_v21 = vpop.f32.mrb[2].mxu1 }
  0xf8   :  { %v471_v22 = vpack.c.bf16 %v545_v20, %v544_v16  ;;  %v491_v23 = vpack.c.bf16 %v553_v21, %v552_v17  ;;  %v218_v24 = vpop.f32.mrb[3].mxu0  ;;  %v250_v25 = vpop.f32.mrb[3].mxu1 }
  0xf9   :  { %v466_v26 = vpack.c.bf16 %v218_v24, %v215_v18  ;;  %v486_v27 = vpack.c.bf16 %v250_v25, %v247_v19 }
  0xfa   :  { %503 = vst [vmem:[%s679_s2 + $0x8] sm:$0xff] %v471_v22   ;;  %507 = vst [vmem:[%s679_s2 + $0x28] sm:$0xff] %v491_v23  }
  0xfb   :  { %467 = vst [vmem:[%s679_s2] sm:$0xff] %v466_v26   ;;  %506 = vst [vmem:[%s679_s2 + $0x20] sm:$0xff] %v486_v27  }
  0xfd   :  { %v548_v28 = vpop.f32.mrb[4].mxu0  ;;  %v556_v29 = vpop.f32.mrb[4].mxu1 }
  0xfe   :  { %v231_v30 = vpop.f32.mrb[5].mxu0  ;;  %v263_v31 = vpop.f32.mrb[5].mxu1 }
  0xff   :  { %v549_v32 = vpop.f32.mrb[6].mxu0  ;;  %v557_v33 = vpop.f32.mrb[6].mxu1 }
 0x100   :  { %v481_v34 = vpack.c.bf16 %v549_v32, %v548_v28  ;;  %v501_v35 = vpack.c.bf16 %v557_v33, %v556_v29  ;;  %v234_v36 = vpop.f32.mrb[7].mxu0  ;;  %v266_v37 = vpop.f32.mrb[7].mxu1 }
 0x101   :  { %v476_v38 = vpack.c.bf16 %v234_v36, %v231_v30  ;;  %v496_v39 = vpack.c.bf16 %v266_v37, %v263_v31 }
 0x102   :  { %505 = vst [vmem:[%s679_s2 + $0x18] sm:$0xff] %v481_v34   ;;  %509 = vst [vmem:[%s679_s2 + $0x38] sm:$0xff] %v501_v35  }
 0x103   :  { %504 = vst [vmem:[%s679_s2 + $0x10] sm:$0xff] %v476_v38   ;;  %508 = vst [vmem:[%s679_s2 + $0x30] sm:$0xff] %v496_v39  }

// kernel: sgc_forward.3
= control target key start
LH: loop header
LB: loop body
LE: loop exit
PB: predicated region body
PF: predicated region fallthrough
CT: control target
= control target key end

     0   :  { %s583_s1 = inlined_call_operand.vmem [shape: bf16[128,128], index: 1, kind: input, shape index: {}]   ;;  %s584_s0 = inlined_call_operand.vmem [shape: bf16[128,128], index: 0, kind: input, shape index: {}]   ;;  %s585_s2 = inlined_call_operand.vmem [shape: bf16[128,128], index: 2, kind: output, shape index: {}]  }
   0x1   :  { %v480_v0 = vld [vmem:[%s583_s1] sm:$0xff]   ;;  %v481_v1 = vld [vmem:[%s583_s1 + $0x8] sm:$0xff]   ;;  %v482_v2 = vld [vmem:[%s583_s1 + $0x10] sm:$0xff]  }
   0x2   :  { %432 = vmatprep.subr.bf16.mxu0 %v480_v0  ;;  %464 = vmatprep.subr.bf16.mxu1 %v480_v0  ;;  %v483_v3 = vld [vmem:[%s583_s1 + $0x18] sm:$0xff]   ;;  %v488_v4 = vld [vmem:[%s584_s0] sm:$0xff]   ;;  %v485_v7 = vld [vmem:[%s583_s1 + $0x28] sm:$0xff]  }
   0x3   :  { %433 = vmatpush3.bf16.msra.mxu0 %v480_v0  ;;  %472 = vmatpush3.bf16.msra.mxu1 %v480_v0  ;;  %v489_v5 = vld [vmem:[%s584_s0 + $0x20] sm:$0xff]   ;;  %v486_v8 = vld [vmem:[%s583_s1 + $0x30] sm:$0xff]   ;;  %v487_v9 = vld [vmem:[%s583_s1 + $0x38] sm:$0xff]  }
   0x4   :  { %434 = vmatprep.subr.bf16.mxu0 %v481_v1  ;;  %465 = vmatprep.subr.bf16.mxu1 %v481_v1  ;;  %v484_v6 = vld [vmem:[%s583_s1 + $0x20] sm:$0xff]   ;;  %v490_v10 = vld [vmem:[%s584_s0 + $0x8] sm:$0xff]   ;;  %v492_v12 = vld [vmem:[%s584_s0 + $0x10] sm:$0xff]  }
   0x5   :  { %448 = vmatprep.mubr.bf16.mxu0 %v488_v4  ;;  %456 = vmatprep.mubr.bf16.mxu1 %v489_v5  ;;  %v491_v11 = vld [vmem:[%s584_s0 + $0x28] sm:$0xff]   ;;  %v493_v13 = vld [vmem:[%s584_s0 + $0x30] sm:$0xff]   ;;  %v494_v14 = vld [vmem:[%s584_s0 + $0x18] sm:$0xff]  }
   0x6   :  { %v495_v15 = vld [vmem:[%s584_s0 + $0x38] sm:$0xff]  }
   0x7   :  { %435 = vmatpush3.bf16.msra.mxu0 %v481_v1  ;;  %473 = vmatpush3.bf16.msra.mxu1 %v481_v1 }
   0x8   :  { %436 = vmatprep.subr.bf16.mxu0 %v482_v2  ;;  %466 = vmatprep.subr.bf16.mxu1 %v482_v2 }
   0xb   :  { %437 = vmatpush3.bf16.msra.mxu0 %v482_v2  ;;  %474 = vmatpush3.bf16.msra.mxu1 %v482_v2 }
   0xc   :  { %438 = vmatprep.subr.bf16.mxu0 %v483_v3  ;;  %467 = vmatprep.subr.bf16.mxu1 %v483_v3 }
   0xf   :  { %439 = vmatpush3.bf16.msra.mxu0 %v483_v3  ;;  %475 = vmatpush3.bf16.msra.mxu1 %v483_v3 }
  0x10   :  { %440 = vmatprep.subr.bf16.mxu0 %v484_v6  ;;  %468 = vmatprep.subr.bf16.mxu1 %v484_v6 }
  0x13   :  { %441 = vmatpush3.bf16.msra.mxu0 %v484_v6  ;;  %476 = vmatpush3.bf16.msra.mxu1 %v484_v6 }
  0x14   :  { %442 = vmatprep.subr.bf16.mxu0 %v485_v7  ;;  %469 = vmatprep.subr.bf16.mxu1 %v485_v7 }
  0x17   :  { %443 = vmatpush3.bf16.msra.mxu0 %v485_v7  ;;  %477 = vmatpush3.bf16.msra.mxu1 %v485_v7 }
  0x18   :  { %444 = vmatprep.subr.bf16.mxu0 %v486_v8  ;;  %470 = vmatprep.subr.bf16.mxu1 %v486_v8 }
  0x1b   :  { %445 = vmatpush3.bf16.msra.mxu0 %v486_v8  ;;  %478 = vmatpush3.bf16.msra.mxu1 %v486_v8 }
  0x1c   :  { %446 = vmatprep.subr.bf16.mxu0 %v487_v9  ;;  %471 = vmatprep.subr.bf16.mxu1 %v487_v9 }
  0x1f   :  { %447 = vmatpush3.bf16.msra.mxu0 %v487_v9  ;;  %479 = vmatpush3.bf16.msra.mxu1 %v487_v9 }
  0x22   :  { %449 = vmatmul.mubr.bf16.vlgmr.msra.gmra.mrb[0].mxu0 %v490_v10  ;;  %457 = vmatmul.mubr.bf16.vlgmr.msra.gmra.mrb[0].mxu1 %v491_v11 }
  0x23   :  { %452 = vmatprep.mubr.bf16.mxu0 %v492_v12  ;;  %460 = vmatprep.mubr.bf16.mxu1 %v493_v13 }
  0x2a   :  { %453 = vmatmul.mubr.bf16.gmra.mrb[4].mxu0 %v494_v14  ;;  %461 = vmatmul.mubr.bf16.gmra.mrb[4].mxu1 %v495_v15 }
  0xf5   :  { %v450_v16 = vpop.f32.mrb[0].mxu0  ;;  %v458_v17 = vpop.f32.mrb[0].mxu1 }
  0xf6   :  { %v174_v18 = vpop.f32.mrb[1].mxu0  ;;  %v206_v19 = vpop.f32.mrb[1].mxu1 }
  0xf7   :  { %v451_v20 = vpop.f32.mrb[2].mxu0  ;;  %v459_v21 = vpop.f32.mrb[2].mxu1 }
  0xf8   :  { %v377_v22 = vpack.c.bf16 %v451_v20, %v450_v16  ;;  %v397_v23 = vpack.c.bf16 %v459_v21, %v458_v17  ;;  %v177_v24 = vpop.f32.mrb[3].mxu0  ;;  %v209_v25 = vpop.f32.mrb[3].mxu1 }
  0xf9   :  { %v372_v26 = vpack.c.bf16 %v177_v24, %v174_v18  ;;  %v392_v27 = vpack.c.bf16 %v209_v25, %v206_v19 }
  0xfa   :  { %409 = vst [vmem:[%s585_s2 + $0x8] sm:$0xff] %v377_v22   ;;  %413 = vst [vmem:[%s585_s2 + $0x28] sm:$0xff] %v397_v23  }
  0xfb   :  { %373 = vst [vmem:[%s585_s2] sm:$0xff] %v372_v26   ;;  %412 = vst [vmem:[%s585_s2 + $0x20] sm:$0xff] %v392_v27  }
  0xfd   :  { %v454_v28 = vpop.f32.mrb[4].mxu0  ;;  %v462_v29 = vpop.f32.mrb[4].mxu1 }
  0xfe   :  { %v190_v30 = vpop.f32.mrb[5].mxu0  ;;  %v222_v31 = vpop.f32.mrb[5].mxu1 }
  0xff   :  { %v455_v32 = vpop.f32.mrb[6].mxu0  ;;  %v463_v33 = vpop.f32.mrb[6].mxu1 }
 0x100   :  { %v387_v34 = vpack.c.bf16 %v455_v32, %v454_v28  ;;  %v407_v35 = vpack.c.bf16 %v463_v33, %v462_v29  ;;  %v193_v36 = vpop.f32.mrb[7].mxu0  ;;  %v225_v37 = vpop.f32.mrb[7].mxu1 }
 0x101   :  { %v382_v38 = vpack.c.bf16 %v193_v36, %v190_v30  ;;  %v402_v39 = vpack.c.bf16 %v225_v37, %v222_v31 }
 0x102   :  { %411 = vst [vmem:[%s585_s2 + $0x18] sm:$0xff] %v387_v34   ;;  %415 = vst [vmem:[%s585_s2 + $0x38] sm:$0xff] %v407_v35  }
 0x103   :  { %410 = vst [vmem:[%s585_s2 + $0x10] sm:$0xff] %v382_v38   ;;  %414 = vst [vmem:[%s585_s2 + $0x30] sm:$0xff] %v402_v39  }

// kernel: sgc_forward.5
= control target key start
LH: loop header
LB: loop body
LE: loop exit
PB: predicated region body
PF: predicated region fallthrough
CT: control target
= control target key end

     0   :  { %s897_s1 = inlined_call_operand.vmem [shape: bf16[128,128], index: 1, kind: input, shape index: {}]   ;;  %s898_s0 = inlined_call_operand.vmem [shape: bf16[128,128], index: 0, kind: input, shape index: {}]   ;;  %s899_s2 = inlined_call_operand.vmem [shape: f32[1,128], index: 2, kind: input, shape index: {}]   ;;  %s900_s3 = inlined_call_operand.vmem [shape: f32[128,128], index: 3, kind: output, shape index: {}]  }
   0x1   :  { %v618_v0 = vld [vmem:[%s897_s1] sm:$0xff]   ;;  %v619_v1 = vld [vmem:[%s897_s1 + $0x8] sm:$0xff]   ;;  %v620_v2 = vld [vmem:[%s897_s1 + $0x10] sm:$0xff]  }
   0x2   :  { %570 = vmatprep.subr.bf16.mxu0 %v618_v0  ;;  %602 = vmatprep.subr.bf16.mxu1 %v618_v0  ;;  %v621_v3 = vld [vmem:[%s897_s1 + $0x18] sm:$0xff]   ;;  %v626_v4 = vld [vmem:[%s898_s0] sm:$0xff]   ;;  %v623_v7 = vld [vmem:[%s897_s1 + $0x28] sm:$0xff]  }
   0x3   :  { %571 = vmatpush3.bf16.msra.mxu0 %v618_v0  ;;  %610 = vmatpush3.bf16.msra.mxu1 %v618_v0  ;;  %v627_v5 = vld [vmem:[%s898_s0 + $0x20] sm:$0xff]   ;;  %v624_v8 = vld [vmem:[%s897_s1 + $0x30] sm:$0xff]   ;;  %v625_v9 = vld [vmem:[%s897_s1 + $0x38] sm:$0xff]  }
   0x4   :  { %572 = vmatprep.subr.bf16.mxu0 %v619_v1  ;;  %603 = vmatprep.subr.bf16.mxu1 %v619_v1  ;;  %v622_v6 = vld [vmem:[%s897_s1 + $0x20] sm:$0xff]   ;;  %v628_v10 = vld [vmem:[%s898_s0 + $0x8] sm:$0xff]   ;;  %v630_v12 = vld [vmem:[%s898_s0 + $0x10] sm:$0xff]  }
   0x5   :  { %586 = vmatprep.mubr.bf16.mxu0 %v626_v4  ;;  %594 = vmatprep.mubr.bf16.mxu1 %v627_v5  ;;  %v629_v11 = vld [vmem:[%s898_s0 + $0x28] sm:$0xff]   ;;  %v632_v13 = vld [vmem:[%s898_s0 + $0x30] sm:$0xff]   ;;  %v631_v14 = vld [vmem:[%s898_s0 + $0x18] sm:$0xff]  }
   0x6   :  { %v633_v15 = vld [vmem:[%s898_s0 + $0x38] sm:$0xff]   ;;  %v553_v16 = vld [vmem:[%s899_s2] ss:$0 sm:$0xff] }
   0x7   :  { %573 = vmatpush3.bf16.msra.mxu0 %v619_v1  ;;  %611 = vmatpush3.bf16.msra.mxu1 %v619_v1 }
   0x8   :  { %574 = vmatprep.subr.bf16.mxu0 %v620_v2  ;;  %604 = vmatprep.subr.bf16.mxu1 %v620_v2 }
   0xb   :  { %575 = vmatpush3.bf16.msra.mxu0 %v620_v2  ;;  %612 = vmatpush3.bf16.msra.mxu1 %v620_v2 }
   0xc   :  { %576 = vmatprep.subr.bf16.mxu0 %v621_v3  ;;  %605 = vmatprep.subr.bf16.mxu1 %v621_v3 }
   0xf   :  { %577 = vmatpush3.bf16.msra.mxu0 %v621_v3  ;;  %613 = vmatpush3.bf16.msra.mxu1 %v621_v3 }
  0x10   :  { %578 = vmatprep.subr.bf16.mxu0 %v622_v6  ;;  %606 = vmatprep.subr.bf16.mxu1 %v622_v6 }
  0x13   :  { %579 = vmatpush3.bf16.msra.mxu0 %v622_v6  ;;  %614 = vmatpush3.bf16.msra.mxu1 %v622_v6 }
  0x14   :  { %580 = vmatprep.subr.bf16.mxu0 %v623_v7  ;;  %607 = vmatprep.subr.bf16.mxu1 %v623_v7 }
  0x17   :  { %581 = vmatpush3.bf16.msra.mxu0 %v623_v7  ;;  %615 = vmatpush3.bf16.msra.mxu1 %v623_v7 }
  0x18   :  { %582 = vmatprep.subr.bf16.mxu0 %v624_v8  ;;  %608 = vmatprep.subr.bf16.mxu1 %v624_v8 }
  0x1b   :  { %583 = vmatpush3.bf16.msra.mxu0 %v624_v8  ;;  %616 = vmatpush3.bf16.msra.mxu1 %v624_v8 }
  0x1c   :  { %584 = vmatprep.subr.bf16.mxu0 %v625_v9  ;;  %609 = vmatprep.subr.bf16.mxu1 %v625_v9 }
  0x1f   :  { %585 = vmatpush3.bf16.msra.mxu0 %v625_v9  ;;  %617 = vmatpush3.bf16.msra.mxu1 %v625_v9 }
  0x22   :  { %587 = vmatmul.mubr.bf16.vlgmr.msra.gmra.mrb[0].mxu0 %v628_v10  ;;  %595 = vmatmul.mubr.bf16.vlgmr.msra.gmra.mrb[0].mxu1 %v629_v11 }
  0x23   :  { %590 = vmatprep.mubr.bf16.mxu0 %v630_v12  ;;  %598 = vmatprep.mubr.bf16.mxu1 %v632_v13 }
  0x2a   :  { %591 = vmatmul.mubr.bf16.gmra.mrb[4].mxu0 %v631_v14  ;;  %599 = vmatmul.mubr.bf16.gmra.mrb[4].mxu1 %v633_v15 }
  0xf5   :  { %v588_v17 = vpop.f32.mrb[0].mxu0  ;;  %v596_v18 = vpop.f32.mrb[0].mxu1 }
  0xf6   :  { %v341_v19 = vadd.f32 %v588_v17, %v553_v16  ;;  %v349_v20 = vadd.f32 %v596_v18, %v553_v16  ;;  %v218_v21 = vpop.f32.mrb[1].mxu0  ;;  %v250_v22 = vpop.f32.mrb[1].mxu1 }
  0xf7   :  { %v589_v23 = vpop.f32.mrb[2].mxu0  ;;  %v597_v24 = vpop.f32.mrb[2].mxu1  ;;  %v339_v27 = vadd.f32 %v553_v16, %v218_v21  ;;  %v347_v31 = vadd.f32 %v553_v16, %v250_v22 }
  0xf8   :  { %375 = vmax.xlane.f32.xlu0 %v349_v20  ;;  %v253_v25 = vpop.f32.mrb[3].mxu1  ;;  %359 = vmax.xlane.f32.xlu1 %v341_v19  ;;  %v221_v26 = vpop.f32.mrb[3].mxu0  ;;  %v342_v28 = vadd.f32 %v589_v23, %v553_v16  ;;  %v350_v32 = vadd.f32 %v597_v24, %v553_v16 }
  0xf9   :  { %v348_v39 = vadd.f32 %v553_v16, %v253_v25  ;;  %v340_v40 = vadd.f32 %v553_v16, %v221_v26 }
  0xfc   :  { %355 = vmax.xlane.f32.xlu0 %v339_v27  ;;  %361 = vmax.xlane.f32.xlu1 %v342_v28 }
  0xfd   :  { %v592_v29 = vpop.f32.mrb[4].mxu0  ;;  %v600_v30 = vpop.f32.mrb[4].mxu1 }
  0xfe   :  { %v234_v33 = vpop.f32.mrb[5].mxu0  ;;  %v266_v34 = vpop.f32.mrb[5].mxu1  ;;  %v345_v41 = vadd.f32 %v592_v29, %v553_v16  ;;  %v775_v47 = vadd.f32 %v600_v30, %v553_v16 }
  0xff   :  { %v593_v35 = vpop.f32.mrb[6].mxu0  ;;  %v601_v36 = vpop.f32.mrb[6].mxu1  ;;  %v343_v43 = vadd.f32 %v553_v16, %v234_v33  ;;  %v769_v45 = vadd.f32 %v553_v16, %v266_v34 }
 0x100   :  { %371 = vmax.xlane.f32.xlu0 %v347_v31  ;;  %377 = vmax.xlane.f32.xlu1 %v350_v32  ;;  %v237_v37 = vpop.f32.mrb[7].mxu0  ;;  %v269_v38 = vpop.f32.mrb[7].mxu1  ;;  %v346_v42 = vadd.f32 %v593_v35, %v553_v16  ;;  %v777_v48 = vadd.f32 %v601_v36, %v553_v16 }
 0x101   :  { %v344_v44 = vadd.f32 %v553_v16, %v237_v37  ;;  %v771_v46 = vadd.f32 %v553_v16, %v269_v38 }
 0x104   :  { %373 = vmax.xlane.f32.xlu1 %v348_v39  ;;  %357 = vmax.xlane.f32.xlu0 %v340_v40 }
 0x108   :  { %367 = vmax.xlane.f32.xlu0 %v345_v41  ;;  %369 = vmax.xlane.f32.xlu1 %v346_v42 }
 0x10c   :  { %363 = vmax.xlane.f32.xlu0 %v343_v43  ;;  %365 = vmax.xlane.f32.xlu1 %v344_v44 }
 0x110   :  { %379 = vmax.xlane.f32.xlu0 %v769_v45  ;;  %381 = vmax.xlane.f32.xlu1 %v771_v46 }
 0x114   :  { %383 = vmax.xlane.f32.xlu0 %v775_v47  ;;  %385 = vmax.xlane.f32.xlu1 %v777_v48 }
 0x185   :  { %v376_v49 = vpop.xlane.xlu0 %375  ;;  %v360_v50 = vpop.xlane.xlu1 %359 }
 0x186   :  { %v781_v51 = vsub.f32 %v349_v20, %v376_v49  ;;  %v783_v52 = vsub.f32 %v341_v19, %v360_v50 }
 0x188   :  { %v407_v53 = vmul.f32 1.442695, %v783_v52  ;;  %v423_v56 = vmul.f32 1.442695, %v781_v51 }
 0x189   :  { %v356_v54 = vpop.xlane.xlu0 %355  ;;  %v362_v55 = vpop.xlane.xlu1 %361 }
 0x18a   :  { %v787_v57 = vsub.f32 %v339_v27, %v356_v54  ;;  %v789_v58 = vsub.f32 %v342_v28, %v362_v55  ;;  %634 = vpow2.f32 %v407_v53 }
 0x18b   :  { %636 = vpow2.f32 %v423_v56 }
 0x18c   :  { %v409_v59 = vmul.f32 1.442695, %v789_v58  ;;  %v403_v62 = vmul.f32 1.442695, %v787_v57 }
 0x18d   :  { %v372_v60 = vpop.xlane.xlu0 %371  ;;  %v378_v61 = vpop.xlane.xlu1 %377 }
 0x18e   :  { %v793_v63 = vsub.f32 %v347_v31, %v372_v60  ;;  %v795_v0 = vsub.f32 %v350_v32, %v378_v61  ;;  %638 = vpow2.f32 %v409_v59 }
 0x18f   :  { %640 = vpow2.f32 %v403_v62 }
 0x190   :  { %v425_v1 = vmul.f32 1.442695, %v795_v0  ;;  %v419_v4 = vmul.f32 1.442695, %v793_v63 }
 0x191   :  { %v374_v2 = vpop.xlane.xlu1 %373  ;;  %v358_v3 = vpop.xlane.xlu0 %357 }
 0x192   :  { %v799_v5 = vsub.f32 %v340_v40, %v358_v3  ;;  %642 = vpow2.f32 %v425_v1  ;;  %v801_v6 = vsub.f32 %v348_v39, %v374_v2 }
 0x193   :  { %644 = vpow2.f32 %v419_v4 }
 0x194   :  { %v405_v7 = vmul.f32 1.442695, %v799_v5  ;;  %v635_v8 = vpop.eup %634  ;;  %v421_v12 = vmul.f32 1.442695, %v801_v6 }
 0x195   :  { %v368_v9 = vpop.xlane.xlu0 %367  ;;  %v370_v10 = vpop.xlane.xlu1 %369  ;;  %439 = vadd.xlane.f32.xlu0 %v635_v8 }
 0x196   :  { %v804_v11 = vsub.f32 %v345_v41, %v368_v9  ;;  %646 = vpow2.f32 %v405_v7  ;;  %v807_v13 = vsub.f32 %v346_v42, %v370_v10  ;;  %v637_v14 = vpop.eup %636 }
 0x198   :  { %v415_v15 = vmul.f32 1.442695, %v804_v11  ;;  %v639_v16 = vpop.eup %638  ;;  %v417_v20 = vmul.f32 1.442695, %v807_v13 }
 0x199   :  { %v364_v17 = vpop.xlane.xlu0 %363  ;;  %v366_v18 = vpop.xlane.xlu1 %365  ;;  %455 = vadd.xlane.f32.xlu0 %v637_v14  ;;  %441 = vadd.xlane.f32.xlu1 %v639_v16 }
 0x19a   :  { %648 = vpow2.f32 %v415_v15  ;;  %v810_v19 = vsub.f32 %v343_v43, %v364_v17  ;;  %v813_v21 = vsub.f32 %v344_v44, %v366_v18  ;;  %v641_v22 = vpop.eup %640 }
 0x19b   :  { %650 = vpow2.f32 %v421_v12 }
 0x19c   :  { %v411_v23 = vmul.f32 1.442695, %v810_v19  ;;  %v643_v24 = vpop.eup %642  ;;  %v413_v28 = vmul.f32 1.442695, %v813_v21 }
 0x19d   :  { %v380_v25 = vpop.xlane.xlu0 %379  ;;  %v382_v26 = vpop.xlane.xlu1 %381  ;;  %435 = vadd.xlane.f32.xlu0 %v641_v22  ;;  %457 = vadd.xlane.f32.xlu1 %v643_v24 }
 0x19e   :  { %652 = vpow2.f32 %v411_v23  ;;  %v817_v27 = vsub.f32 %v769_v45, %v380_v25  ;;  %v821_v29 = vsub.f32 %v771_v46, %v382_v26  ;;  %v645_v30 = vpop.eup %644 }
 0x19f   :  { %654 = vpow2.f32 %v417_v20 }
 0x1a0   :  { %v427_v31 = vmul.f32 1.442695, %v817_v27  ;;  %v647_v32 = vpop.eup %646  ;;  %v429_v36 = vmul.f32 1.442695, %v821_v29 }
 0x1a1   :  { %v384_v33 = vpop.xlane.xlu0 %383  ;;  %v386_v34 = vpop.xlane.xlu1 %385  ;;  %451 = vadd.xlane.f32.xlu0 %v645_v30  ;;  %437 = vadd.xlane.f32.xlu1 %v647_v32 }
 0x1a2   :  { %656 = vpow2.f32 %v427_v31  ;;  %v825_v35 = vsub.f32 %v775_v47, %v384_v33  ;;  %v829_v37 = vsub.f32 %v777_v48, %v386_v34 }
 0x1a3   :  { %658 = vpow2.f32 %v413_v28 }
 0x1a4   :  { %v649_v38 = vpop.eup %648  ;;  %v431_v39 = vmul.f32 1.442695, %v825_v35  ;;  %v433_v41 = vmul.f32 1.442695, %v829_v37 }
 0x1a5   :  { %v651_v40 = vpop.eup %650  ;;  %447 = vadd.xlane.f32.xlu0 %v649_v38 }
 0x1a6   :  { %660 = vpow2.f32 %v431_v39  ;;  %453 = vadd.xlane.f32.xlu1 %v651_v40 }
 0x1a7   :  { %662 = vpow2.f32 %v429_v36 }
 0x1a8   :  { %v653_v42 = vpop.eup %652  ;;  %664 = vpow2.f32 %v433_v41 }
 0x1a9   :  { %v655_v43 = vpop.eup %654  ;;  %443 = vadd.xlane.f32.xlu0 %v653_v42 }
 0x1aa   :  { %449 = vadd.xlane.f32.xlu1 %v655_v43 }
 0x1ac   :  { %v657_v44 = vpop.eup %656 }
 0x1ad   :  { %v659_v45 = vpop.eup %658  ;;  %459 = vadd.xlane.f32.xlu0 %v657_v44 }
 0x1ae   :  { %445 = vadd.xlane.f32.xlu1 %v659_v45 }
 0x1b0   :  { %v661_v46 = vpop.eup %660 }
 0x1b1   :  { %v663_v47 = vpop.eup %662  ;;  %463 = vadd.xlane.f32.xlu0 %v661_v46 }
 0x1b2   :  { %461 = vadd.xlane.f32.xlu1 %v663_v47  ;;  %v665_v48 = vpop.eup %664 }
 0x1b6   :  { %465 = vadd.xlane.f32.xlu1 %v665_v48 }
 0x222   :  { %v440_v49 = vpop.xlane.xlu0 %439 }
 0x223   :  { %666 = vlog2.f32 %v440_v49 }
 0x226   :  { %v456_v50 = vpop.xlane.xlu0 %455  ;;  %v442_v53 = vpop.xlane.xlu1 %441 }
 0x227   :  { %668 = vlog2.f32 %v456_v50 }
 0x228   :  { %670 = vlog2.f32 %v442_v53 }
 0x22a   :  { %v436_v54 = vpop.xlane.xlu0 %435  ;;  %v458_v55 = vpop.xlane.xlu1 %457 }
 0x22b   :  { %672 = vlog2.f32 %v436_v54 }
 0x22c   :  { %674 = vlog2.f32 %v458_v55 }
 0x22d   :  { %v667_v56 = vpop.eup %666 }
 0x22e   :  { %v472_v59 = vmul.f32 0.6931472, %v667_v56  ;;  %v452_v60 = vpop.xlane.xlu0 %451  ;;  %v438_v61 = vpop.xlane.xlu1 %437 }
 0x22f   :  { %676 = vlog2.f32 %v452_v60 }
 0x230   :  { %v501_v62 = vsub.f32 %v783_v52, %v472_v59  ;;  %678 = vlog2.f32 %v438_v61 }
 0x231   :  { %v669_v1 = vpop.eup %668 }
 0x232   :  { %v671_v2 = vpop.eup %670  ;;  %517 = vst [vmem:[%s900_s3 + $0x10] sm:$0xff] %v501_v62  ;;  %v488_v3 = vmul.f32 0.6931472, %v669_v1  ;;  %v448_v4 = vpop.xlane.xlu0 %447 }
 0x233   :  { %v454_v7 = vpop.xlane.xlu1 %453  ;;  %v474_v8 = vmul.f32 0.6931472, %v671_v2  ;;  %680 = vlog2.f32 %v448_v4 }
 0x234   :  { %v509_v9 = vsub.f32 %v781_v51, %v488_v3  ;;  %682 = vlog2.f32 %v454_v7 }
 0x235   :  { %v673_v10 = vpop.eup %672  ;;  %v502_v12 = vsub.f32 %v789_v58, %v474_v8 }
 0x236   :  { %v675_v14 = vpop.eup %674  ;;  %525 = vst [vmem:[%s900_s3 + $0x50] sm:$0xff] %v509_v9  ;;  %v468_v52 = vmul.f32 0.6931472, %v673_v10  ;;  %v444_v15 = vpop.xlane.xlu0 %443 }
 0x237   :  { %v450_v16 = vpop.xlane.xlu1 %449  ;;  %518 = vst [vmem:[%s900_s3 + $0x18] sm:$0xff] %v502_v12  ;;  %v490_v17 = vmul.f32 0.6931472, %v675_v14  ;;  %684 = vlog2.f32 %v444_v15 }
 0x238   :  { %v499_v51 = vsub.f32 %v787_v57, %v468_v52  ;;  %686 = vlog2.f32 %v450_v16 }
 0x239   :  { %v677_v18 = vpop.eup %676  ;;  %v510_v58 = vsub.f32 %v795_v0, %v490_v17 }
 0x23a   :  { %v679_v20 = vpop.eup %678  ;;  %515 = vst [vmem:[%s900_s3] sm:$0xff] %v499_v51  ;;  %v484_v22 = vmul.f32 0.6931472, %v677_v18  ;;  %v460_v23 = vpop.xlane.xlu0 %459 }
 0x23b   :  { %v446_v24 = vpop.xlane.xlu1 %445  ;;  %526 = vst [vmem:[%s900_s3 + $0x58] sm:$0xff] %v510_v58  ;;  %v470_v25 = vmul.f32 0.6931472, %v679_v20  ;;  %688 = vlog2.f32 %v460_v23 }
 0x23c   :  { %v507_v57 = vsub.f32 %v793_v63, %v484_v22  ;;  %690 = vlog2.f32 %v446_v24 }
 0x23d   :  { %v681_v26 = vpop.eup %680  ;;  %v500_v0 = vsub.f32 %v799_v5, %v470_v25 }
 0x23e   :  { %v683_v28 = vpop.eup %682  ;;  %523 = vst [vmem:[%s900_s3 + $0x40] sm:$0xff] %v507_v57  ;;  %v480_v30 = vmul.f32 0.6931472, %v681_v26  ;;  %v464_v31 = vpop.xlane.xlu0 %463 }
 0x23f   :  { %v462_v32 = vpop.xlane.xlu1 %461  ;;  %516 = vst [vmem:[%s900_s3 + $0x8] sm:$0xff] %v500_v0  ;;  %v486_v33 = vmul.f32 0.6931472, %v683_v28  ;;  %692 = vlog2.f32 %v464_v31 }
 0x240   :  { %v505_v63 = vsub.f32 %v804_v11, %v480_v30  ;;  %694 = vlog2.f32 %v462_v32 }
 0x241   :  { %v685_v34 = vpop.eup %684  ;;  %v508_v5 = vsub.f32 %v801_v6, %v486_v33 }
 0x242   :  { %v687_v36 = vpop.eup %686  ;;  %521 = vst [vmem:[%s900_s3 + $0x30] sm:$0xff] %v505_v63  ;;  %v476_v38 = vmul.f32 0.6931472, %v685_v34 }
 0x243   :  { %v466_v39 = vpop.xlane.xlu1 %465  ;;  %524 = vst [vmem:[%s900_s3 + $0x48] sm:$0xff] %v508_v5  ;;  %v482_v40 = vmul.f32 0.6931472, %v687_v36 }
 0x244   :  { %696 = vlog2.f32 %v466_v39  ;;  %v503_v41 = vsub.f32 %v810_v19, %v476_v38 }
 0x245   :  { %v689_v11 = vpop.eup %688  ;;  %v506_v42 = vsub.f32 %v807_v13, %v482_v40 }
 0x246   :  { %v691_v43 = vpop.eup %690  ;;  %519 = vst [vmem:[%s900_s3 + $0x20] sm:$0xff] %v503_v41  ;;  %v492_v6 = vmul.f32 0.6931472, %v689_v11 }
 0x247   :  { %522 = vst [vmem:[%s900_s3 + $0x38] sm:$0xff] %v506_v42  ;;  %v478_v44 = vmul.f32 0.6931472, %v691_v43 }
 0x248   :  { %v511_v45 = vsub.f32 %v817_v27, %v492_v6 }
 0x249   :  { %v693_v46 = vpop.eup %692  ;;  %v504_v47 = vsub.f32 %v813_v21, %v478_v44 }
 0x24a   :  { %v695_v19 = vpop.eup %694  ;;  %527 = vst [vmem:[%s900_s3 + $0x60] sm:$0xff] %v511_v45  ;;  %v496_v13 = vmul.f32 0.6931472, %v693_v46 }
 0x24b   :  { %520 = vst [vmem:[%s900_s3 + $0x28] sm:$0xff] %v504_v47  ;;  %v494_v48 = vmul.f32 0.6931472, %v695_v19 }
 0x24c   :  { %v513_v49 = vsub.f32 %v825_v35, %v496_v13 }
 0x24d   :  { %v512_v53 = vsub.f32 %v821_v29, %v494_v48 }
 0x24e   :  { %v697_v50 = vpop.eup %696  ;;  %529 = vst [vmem:[%s900_s3 + $0x70] sm:$0xff] %v513_v49 }
 0x24f   :  { %v498_v21 = vmul.f32 0.6931472, %v697_v50  ;;  %528 = vst [vmem:[%s900_s3 + $0x68] sm:$0xff] %v512_v53 }
 0x251   :  { %v514_v27 = vsub.f32 %v829_v37, %v498_v21 }
 0x253   :  { %530 = vst [vmem:[%s900_s3 + $0x78] sm:$0xff] %v514_v27 }

</bundles_post_ra>
